<compile_context>
chip_gen: v7x
topology: tpu7x:2x2x1
jax: 0.10.0
libtpu: 0.0.40
codegen_flags: <defaults>
</compile_context>

<pallas_src>
import functools

import jax
import jax.numpy as jnp
from jax.experimental import pallas as pl
from jax.experimental.pallas import tpu as pltpu


def _round_up(x, m):
    return ((x + m - 1) // m) * m


def _video_embedding_kernel(t_ref, vid_ref, w_ref, out_ref, *,
                            num_frequencies, num_videos, k_pad):
    # t_ref:   (1, TN)  f32   times (samples on lanes)
    # vid_ref: (1, TN)  i32   video ids
    # w_ref:   (D, V*Kp)      weight slab, W2[d, v*Kp + k] = W[v, d, k]
    # out_ref: (D, TN)  f32   output tile (lane-dense stores)
    t = t_ref[...].astype(jnp.float32)          # (1, TN)
    vids = vid_ref[...]                         # (1, TN) i32
    tn = t.shape[-1]
    cdt = w_ref.dtype                           # MXU / masking dtype

    # Fourier basis rows [1, sin(pi t), cos(pi t), sin(2 pi t), cos(2 pi t), ...]
    # via double-angle recursion: only sin(pi t) / cos(pi t) hit the EUP.
    rows = [jnp.ones_like(t)]
    if num_frequencies > 0:
        s = jnp.sin(jnp.pi * t)
        c = jnp.cos(jnp.pi * t)
        for f in range(num_frequencies):
            rows.append(s)
            rows.append(c)
            if f + 1 < num_frequencies:
                s, c = 2.0 * s * c, c * c - s * s
    n_zero = k_pad - len(rows)
    if n_zero > 0:
        rows.append(jnp.zeros((n_zero, tn), jnp.float32))
    basis = jnp.concatenate(rows, axis=0).astype(cdt)   # (Kp, TN), sublane-aligned

    # Per-video masked basis blocks -> (V*Kp, TN).  The one-hot video gather is
    # fused into the matmul operand; padded basis rows hit zero weight columns.
    # Masking is done in the compute dtype (bf16 on the fast path) so the VPU
    # work and VMEM temporaries are half-width.
    blocks = []
    for v in range(num_videos):
        mask = (vids == v).astype(cdt)          # (1, TN)
        blocks.append(basis * mask)             # (Kp, TN)
    m = jnp.concatenate(blocks, axis=0)         # (V*Kp, TN)

    # Single MXU matmul; f32 accumulation regardless of operand dtype.
    out_ref[...] = jnp.dot(w_ref[...], m, preferred_element_type=jnp.float32)


def video_embedding(times, video_ids, weights, num_frequencies, *,
                    tile_n=1024, compute_dtype=jnp.bfloat16):
    """Pallas forward of map4d VideoEmbedding.

    times:     float array (flattened internally, as in the PyTorch module)
    video_ids: integer array with the same number of elements as times
    weights:   (num_videos, embedding_dim, 2*num_frequencies + 1) float32
    """
    orig_shape = times.shape
    t_flat = times.reshape(-1).astype(jnp.float32)
    v_flat = video_ids.reshape(-1).astype(jnp.int32)
    n = t_flat.shape[0]
    num_videos, emb_dim, k_total = weights.shape
    assert k_total == 2 * num_frequencies + 1

    # Contraction axis padded to a sublane multiple so all in-kernel blocks are
    # (8, 128)-aligned.
    k_pad = max(8, _round_up(k_total, 8))
    vk = num_videos * k_pad
    w_item = jnp.dtype(compute_dtype).itemsize

    # Weight slab: (V, D, K) -> zero-pad K -> (D, V*Kp).  Cast once for the MXU.
    w_padded = jnp.pad(weights.astype(jnp.float32),
                       ((0, 0), (0, 0), (0, k_pad - k_total)))
    w2 = jnp.transpose(w_padded, (1, 0, 2)).reshape(emb_dim, vk)
    w2 = w2.astype(compute_dtype)

    def _vmem_need(tile):
        return (2 * emb_dim * vk * w_item          # resident weights (2 bufs)
                + 2 * tile * 4 + 2 * tile * 4      # time / id tiles (x2 bufs)
                + 2 * emb_dim * tile * 4           # output tiles (x2 bufs)
                + k_pad * tile * 4                 # f32 basis temporary
                + (k_pad + vk) * tile * w_item)    # compute-dtype basis + M

    # Effective sample tile: big (default 1024) for large N, clamped (and kept a
    # multiple of 128 lanes) for small inputs, and halved until the VMEM budget
    # fits comfortably (v7x has only 64 MiB/core).
    tile = max(128, min(_round_up(tile_n, 128), _round_up(n, 128)))
    while tile > 128 and _vmem_need(tile) > (40 << 20):
        tile = max(128, _round_up(tile // 2, 128))

    n_total = _round_up(n, tile)
    pad = n_total - n
    if pad:
        t_flat = jnp.pad(t_flat, (0, pad))
        v_flat = jnp.pad(v_flat, (0, pad))
    t_row = t_flat.reshape(1, n_total)          # samples on the lane axis
    v_row = v_flat.reshape(1, n_total)

    grid = (n_total // tile,)
    vmem_limit = int(min(max(_vmem_need(tile) + (4 << 20), 16 << 20), 64 << 20))

    kernel = functools.partial(_video_embedding_kernel,
                               num_frequencies=num_frequencies,
                               num_videos=num_videos,
                               k_pad=k_pad)

    out = pl.pallas_call(
        kernel,
        out_shape=jax.ShapeDtypeStruct((emb_dim, n_total), jnp.float32),
        grid=grid,
        in_specs=[
            pl.BlockSpec((1, tile), lambda i: (0, i)),
            pl.BlockSpec((1, tile), lambda i: (0, i)),
            # Constant index_map: weights are DMA'd once and stay resident.
            pl.BlockSpec((emb_dim, vk), lambda i: (0, 0)),
        ],
        out_specs=pl.BlockSpec((emb_dim, tile), lambda i: (0, i)),
        compiler_params=pltpu.CompilerParams(
            dimension_semantics=("parallel",),
            vmem_limit_bytes=vmem_limit),
    )(t_row, v_row, w2)

    # Kernel output is (D, N) (lane-dense stores); restore the (N, D) layout and
    # the PyTorch view((*times.shape[:-1], -1)).
    emb = out[:, :n].T
    return emb.reshape(*orig_shape[:-1], -1)


def video_embedding_reference(times, video_ids, weights, num_frequencies):
    """Pure-JAX reference for validation."""
    orig_shape = times.shape
    t = times.reshape(-1).astype(jnp.float32)
    v = video_ids.reshape(-1).astype(jnp.int32)
    basis = [jnp.ones_like(t)]
    for f in range(num_frequencies):
        phase = (2.0 ** f) * jnp.pi * t
        basis.append(jnp.sin(phase))
        basis.append(jnp.cos(phase))
    basis = jnp.stack(basis, axis=-1)                    # (N, K)
    w_sel = weights[v]                                   # (N, D, K)
    emb = jnp.einsum("ndk,nk->nd", w_sel, basis)
    return emb.reshape(*orig_shape[:-1], -1)


if __name__ == "__main__":
    key = jax.random.PRNGKey(0)
    k_t, k_v, k_w = jax.random.split(key, 3)

    num_videos = 4
    num_frequencies = 3          # K = 2*3 + 1 = 7
    embedding_dim = 32
    batch = 16

    times = jax.random.uniform(k_t, (batch, 1), dtype=jnp.float32)
    video_ids = jax.random.randint(k_v, (batch, 1), 0, num_videos,
                                   dtype=jnp.int32)
    # torch.nn.init.normal_ equivalent: standard normal, deterministic seed.
    weights = jax.random.normal(
        k_w, (num_videos, embedding_dim, 2 * num_frequencies + 1),
        dtype=jnp.float32)

    ref = video_embedding_reference(times, video_ids, weights, num_frequencies)

    # Default (performance) path: bf16 MXU operands, f32 accumulation.
    out = video_embedding(times, video_ids, weights, num_frequencies)
    out = jax.block_until_ready(out)
    assert out.shape == (batch, embedding_dim), out.shape
    assert jnp.allclose(out, ref, atol=1e-1, rtol=5e-2), "bf16 path mismatch"

    # Full-precision path for tight numerical validation.
    out_f32 = video_embedding(times, video_ids, weights, num_frequencies,
                              compute_dtype=jnp.float32)
    out_f32 = jax.block_until_ready(out_f32)
    assert jnp.allclose(out_f32, ref, atol=1e-4, rtol=1e-4), "f32 path mismatch"

    print("KERNEL_OK")
</pallas_src>

<mosaic_0001>
module attributes {stable_mosaic.version = 11 : i64} {
  func.func @_video_embedding_kernel(%arg0: i32, %arg1: memref<1x128xf32, #tpu.memory_space<vmem>>, %arg2: memref<1x128xi32, #tpu.memory_space<vmem>>, %arg3: memref<32x32xbf16, #tpu.memory_space<vmem>>, %arg4: memref<32x128xf32, #tpu.memory_space<vmem>>) attributes {dimension_semantics = [#tpu.dimension_semantics<parallel>], iteration_bounds = array<i64: 1>, scalar_prefetch = 0 : i64, scratch_operands = 0 : i64, tpu.core_type = #tpu.core_type<tc>, window_params = [{transform_indices = @transform_0, window_bounds = array<i64: 1, 128>}, {transform_indices = @transform_1, window_bounds = array<i64: 1, 128>}, {pipeline_mode = #tpu.pipeline_mode<synchronous>, transform_indices = @transform_2, window_bounds = array<i64: 32, 32>}, {transform_indices = @transform_3, window_bounds = array<i64: 32, 128>}]} {
    %c0 = arith.constant 0 : index
    %c0_0 = arith.constant 0 : index
    %0 = vector.load %arg1[%c0, %c0_0] : memref<1x128xf32, #tpu.memory_space<vmem>>, vector<1x128xf32>
    %c0_1 = arith.constant 0 : index
    %c0_2 = arith.constant 0 : index
    %1 = vector.load %arg2[%c0_1, %c0_2] : memref<1x128xi32, #tpu.memory_space<vmem>>, vector<1x128xi32>
    %cst = arith.constant 1.000000e+00 : f32
    %2 = vector.broadcast %cst : f32 to vector<1x128xf32>
    %cst_3 = arith.constant 3.14159274 : f32
    %3 = vector.broadcast %cst_3 : f32 to vector<1x128xf32>
    %4 = arith.mulf %3, %0 : vector<1x128xf32>
    %5 = math.sin %4 : vector<1x128xf32>
    %cst_4 = arith.constant 3.14159274 : f32
    %6 = vector.broadcast %cst_4 : f32 to vector<1x128xf32>
    %7 = arith.mulf %6, %0 : vector<1x128xf32>
    %8 = math.cos %7 : vector<1x128xf32>
    %cst_5 = arith.constant 2.000000e+00 : f32
    %9 = vector.broadcast %cst_5 : f32 to vector<1x128xf32>
    %10 = arith.mulf %9, %5 : vector<1x128xf32>
    %11 = arith.mulf %10, %8 : vector<1x128xf32>
    %12 = arith.mulf %8, %8 : vector<1x128xf32>
    %13 = arith.mulf %5, %5 : vector<1x128xf32>
    %14 = arith.subf %12, %13 : vector<1x128xf32>
    %cst_6 = arith.constant 2.000000e+00 : f32
    %15 = vector.broadcast %cst_6 : f32 to vector<1x128xf32>
    %16 = arith.mulf %15, %11 : vector<1x128xf32>
    %17 = arith.mulf %16, %14 : vector<1x128xf32>
    %18 = arith.mulf %14, %14 : vector<1x128xf32>
    %19 = arith.mulf %11, %11 : vector<1x128xf32>
    %20 = arith.subf %18, %19 : vector<1x128xf32>
    %cst_7 = arith.constant 0.000000e+00 : f32
    %21 = vector.broadcast %cst_7 : f32 to vector<1x128xf32>
    %22 = tpu.concatenate %2, %5, %8, %11, %14, %17, %20, %21 in 0 : vector<1x128xf32>, vector<1x128xf32>, vector<1x128xf32>, vector<1x128xf32>, vector<1x128xf32>, vector<1x128xf32>, vector<1x128xf32>, vector<1x128xf32> -> vector<8x128xf32>
    %23 = arith.truncf %22 : vector<8x128xf32> to vector<8x128xbf16>
    %c0_i32 = arith.constant 0 : i32
    %24 = vector.broadcast %c0_i32 : i32 to vector<1x128xi32>
    %25 = arith.cmpi eq, %1, %24 : vector<1x128xi32>
    %26 = arith.extui %25 : vector<1x128xi1> to vector<1x128xi32>
    %27 = arith.sitofp %26 : vector<1x128xi32> to vector<1x128xf32>
    %28 = arith.truncf %27 : vector<1x128xf32> to vector<1x128xbf16>
    %29 = vector.broadcast %28 : vector<1x128xbf16> to vector<8x128xbf16>
    %30 = arith.mulf %23, %29 : vector<8x128xbf16>
    %c1_i32 = arith.constant 1 : i32
    %31 = vector.broadcast %c1_i32 : i32 to vector<1x128xi32>
    %32 = arith.cmpi eq, %1, %31 : vector<1x128xi32>
    %33 = arith.extui %32 : vector<1x128xi1> to vector<1x128xi32>
    %34 = arith.sitofp %33 : vector<1x128xi32> to vector<1x128xf32>
    %35 = arith.truncf %34 : vector<1x128xf32> to vector<1x128xbf16>
    %36 = vector.broadcast %35 : vector<1x128xbf16> to vector<8x128xbf16>
    %37 = arith.mulf %23, %36 : vector<8x128xbf16>
    %c2_i32 = arith.constant 2 : i32
    %38 = vector.broadcast %c2_i32 : i32 to vector<1x128xi32>
    %39 = arith.cmpi eq, %1, %38 : vector<1x128xi32>
    %40 = arith.extui %39 : vector<1x128xi1> to vector<1x128xi32>
    %41 = arith.sitofp %40 : vector<1x128xi32> to vector<1x128xf32>
    %42 = arith.truncf %41 : vector<1x128xf32> to vector<1x128xbf16>
    %43 = vector.broadcast %42 : vector<1x128xbf16> to vector<8x128xbf16>
    %44 = arith.mulf %23, %43 : vector<8x128xbf16>
    %c3_i32 = arith.constant 3 : i32
    %45 = vector.broadcast %c3_i32 : i32 to vector<1x128xi32>
    %46 = arith.cmpi eq, %1, %45 : vector<1x128xi32>
    %47 = arith.extui %46 : vector<1x128xi1> to vector<1x128xi32>
    %48 = arith.sitofp %47 : vector<1x128xi32> to vector<1x128xf32>
    %49 = arith.truncf %48 : vector<1x128xf32> to vector<1x128xbf16>
    %50 = vector.broadcast %49 : vector<1x128xbf16> to vector<8x128xbf16>
    %51 = arith.mulf %23, %50 : vector<8x128xbf16>
    %52 = tpu.concatenate %30, %37, %44, %51 in 0 : vector<8x128xbf16>, vector<8x128xbf16>, vector<8x128xbf16>, vector<8x128xbf16> -> vector<32x128xbf16>
    %c0_8 = arith.constant 0 : index
    %c0_9 = arith.constant 0 : index
    %53 = vector.load %arg3[%c0_8, %c0_9] : memref<32x32xbf16, #tpu.memory_space<vmem>>, vector<32x32xbf16>
    %cst_10 = arith.constant dense<0.000000e+00> : vector<32x128xf32>
    %54 = tpu.matmul %53, %52, %cst_10 {dimension_numbers = #tpu.dot_dimension_numbers<[1], [0], [0], [1], [0, 0, 1, 1], [], []>} : vector<32x32xbf16>, vector<32x128xbf16>, vector<32x128xf32> -> vector<32x128xf32>
    %c0_11 = arith.constant 0 : index
    %c0_12 = arith.constant 0 : index
    %55 = vector.load %arg4[%c0_11, %c0_12] : memref<32x128xf32, #tpu.memory_space<vmem>>, vector<32x128xf32>
    tpu.vector_store %arg4[%c0_11, %c0_12], %54 {strides = array<i32>} : memref<32x128xf32, #tpu.memory_space<vmem>>, vector<32x128xf32>,
    return
  }
  func.func @transform_0(%arg0: i32) -> (i32, i32) {
    %c0_i32 = arith.constant 0 : i32
    %c0_i32_0 = arith.constant 0 : i32
    return %c0_i32, %arg0 : i32, i32
  }
  func.func @transform_1(%arg0: i32) -> (i32, i32) {
    %c0_i32 = arith.constant 0 : i32
    %c0_i32_0 = arith.constant 0 : i32
    return %c0_i32, %arg0 : i32, i32
  }
  func.func @transform_2(%arg0: i32) -> (i32, i32) {
    %c0_i32 = arith.constant 0 : i32
    %c0_i32_0 = arith.constant 0 : i32
    %c0_i32_1 = arith.constant 0 : i32
    return %c0_i32, %c0_i32_0 : i32, i32
  }
  func.func @transform_3(%arg0: i32) -> (i32, i32) {
    %c0_i32 = arith.constant 0 : i32
    %c0_i32_0 = arith.constant 0 : i32
    return %c0_i32, %arg0 : i32, i32
  }
}

</mosaic_0001>

<bundles_post_ra>
// kernel: tpu_custom_call.1
= control target key start
LH: loop header
LB: loop body
LE: loop exit
PB: predicated region body
PF: predicated region fallthrough
CT: control target
= control target key end

     0   :  { %8 = vsyncpa [#allocation3], 0  ;;  %s713_s0 = inlined_call_operand.hbm [shape: f32[1,128], index: 0, kind: input, shape index: {}]   ;;  %s714_s1 = inlined_call_operand.vmem [shape: s32[1,128], index: 1, kind: input, shape index: {}]   ;;  %s715_s2 = inlined_call_operand.hbm [shape: bf16[32,32], index: 2, kind: input, shape index: {}]   ;;  %s716_s3 = inlined_call_operand.hbm [shape: f32[32,128], index: 3, kind: output, shape index: {}]  }
   0x1   :  { %9 = vsyncpa [#allocation6], 0 }
   0x2   :  { %10 = vsyncpa [#allocation4], 0  ;;  %s589_s12 = smov [#allocation2]   ;;  %s590_s14 = smov [#allocation5]  }
   0x3   :  { %s17_s13 = sshll.u32 %s589_s12, 4  ;;  %s28_s15 = sshll.u32 %s590_s14, 4  ;;  %s18_s13 = int_to_ptr.vmem [resolvable:$true] %s17_s13  ;;  %s623_s15 = int_to_ptr.vmem [resolvable:$true] %s28_s15 }
   0x4   :  { %s517_s18 = scalar_lea.hbm %s713_s0, 16 }
   0x5   :  { %p518_p0 = scmp.ne.s32.totalorder %s713_s0, %s517_s18  ;;  %p521_p1 = scmp.lt.u32.totalorder %s517_s18, %s713_s0 }
   0x7   :  { %p523_p2 = pnand %p521_p1, %p518_p0 }
   0x9   :  { %526 = shalt.err (!%p523_p2)
}
   0xa   :  { %s527_s23 = scalar_lea.vmem %s18_s13, 16  ;;  %s531_s24 = scalar_lea.vmem %s18_s13, 32 }
   0xb   :  { %p528_p3 = scmp.ne.s32.totalorder %s18_s13, %s527_s23  ;;  %p532_p4 = scmp.lt.s32.totalorder %s18_s13, %s18_s13 }
   0xc   :  { %p533_p5 = scmp.lt.s32.totalorder %s531_s24, %s527_s23 }
   0xe   :  { %p534_p6 = por %p533_p5, %p532_p4 }
  0x10   :  { %p535_p7 = pnand %p534_p6, %p528_p3 }
  0x12   :  { %538 = shalt.err (!%p535_p7)
}
  0x13   :  { %20 = dma.hbm_to_vmem [thread:$0]  %s713_s0, 16, %s18_s13, [#allocation3]  }
  0x14   :  { %s539_s29 = scalar_lea.hbm %s715_s2, 256 }
  0x15   :  { %p540_p8 = scmp.ne.s32.totalorder %s715_s2, %s539_s29  ;;  %p543_p9 = scmp.lt.u32.totalorder %s539_s29, %s715_s2 }
  0x17   :  { %p545_p10 = pnand %p543_p9, %p540_p8 }
  0x19   :  { %548 = shalt.err (!%p545_p10)
}
  0x1a   :  { %s549_s7 = scalar_lea.vmem %s623_s15, 256  ;;  %p554_p12 = scmp.lt.s32.totalorder %s623_s15, %s623_s15 }
  0x1b   :  { %p550_p11 = scmp.ne.s32.totalorder %s623_s15, %s549_s7  ;;  %p555_p13 = scmp.lt.s32.totalorder %s549_s7, %s549_s7 }
  0x1d   :  { %p556_p0 = por %p555_p13, %p554_p12 }
  0x1f   :  { %p557_p1 = pnand %p556_p0, %p550_p11 }
  0x21   :  { %560 = shalt.err (!%p557_p1)
}
  0x22   :  { %s591_s0 = smov 64   ;;  %s592_s8 = smov 4  }
  0x23   :  { %34 = dma.hbm_to_vmem [thread:$0]  %s715_s2, 256, %s623_s15, [#allocation6], %s591_s0, %s591_s0, %s592_s8  }
  0x24   :  { %583 = dma.done.wait [#allocation3], 16  }
  0x25   :  { %584 = vsyncadd [#allocation3], 4294967280 }
  0x26   :  { %585 = dma.done.wait [#allocation6], 256  }
  0x27   :  { %586 = vsyncadd [#allocation6], 4294967040  ;;  %v42_v0 = vld [vmem:[#allocation2] sm:$0x1]  ;;  %vm387_vm0 = vcmask 261120   ;;  %v511_v2 = vld [vmem:[#allocation5] sm:$0xff]  }
  0x28   :  { %v654_v1 = vmul.f32 3.1415927, %v42_v0  ;;  %489 = vmatprep.mubr.msk.bf16.mxu0 %vm387_vm0, %v511_v2  ;;  %v593_v14 = vmov 683565275   ;;  %v594_v16 = vmov 2475754826  }
  0x29   :  { %v595_v18 = vmov 2131351028   ;;  %v596_v20 = vmov 2102212464   ;;  %v597_v22 = vmov 920167782  }
  0x2a   :  { %v48_v3 = vand.u32 2139095040, %v654_v1  ;;  %v45_v5 = vand.u32 2147483647, %v654_v1  ;;  %v598_v29 = vmov 1326507024   ;;  %vm47_vm8 = vcmp.lt.s32.totalorder %v654_v1, 0 }
  0x2c   :  { %v49_v4 = vshrl.u32 %v48_v3, 23  ;;  %v52_v8 = vand.u32 8388607, %v45_v5  ;;  %vm46_vm9 = vcmp.le.f32.partialorder %v45_v5, 0.7853982 }
  0x2e   :  { %v465_v6 = vadd.s32 4294967169, %v49_v4  ;;  %v53_v11 = vor.u32 8388608, %v52_v8 }
  0x30   :  { %v55_v7 = vadd.s32 1, %v465_v6  ;;  %v93_v31 = vshll.u32 %v53_v11, 8 }
  0x32   :  { %vm56_vm1 = vcmp.gt.s32.totalorder %v55_v7, 0 }
  0x33   :  { %v57_v9 = vsel %vm56_vm1, %v55_v7, 0 }
  0x34   :  { %v59_v10 = vand.u32 31, %v57_v9  ;;  %v58_v12 = vshrl.u32 %v57_v9, 5 }
  0x36   :  { %v60_v13 = vsub.s32 32, %v59_v10  ;;  %v62_v15 = vshll.u32 %v593_v14, %v59_v10  ;;  %v65_v17 = vshll.u32 %v594_v16, %v59_v10  ;;  %v68_v19 = vshll.u32 %v595_v18, %v59_v10 }
  0x37   :  { %v71_v21 = vshll.u32 %v596_v20, %v59_v10  ;;  %v74_v23 = vshll.u32 %v597_v22, %v59_v10  ;;  %vm77_vm2 = vcmp.lt.s32.totalorder %v58_v12, 1  ;;  %vm80_vm3 = vcmp.lt.s32.totalorder %v58_v12, 4 }
  0x38   :  { %v61_v24 = vshrl.u32 %v593_v14, %v60_v13  ;;  %v63_v25 = vshrl.u32 %v594_v16, %v60_v13  ;;  %v66_v26 = vshrl.u32 %v595_v18, %v60_v13  ;;  %v69_v27 = vshrl.u32 %v596_v20, %v60_v13 }
  0x39   :  { %v72_v28 = vshrl.u32 %v597_v22, %v60_v13  ;;  %v75_v30 = vshrl.u32 %v598_v29, %v60_v13  ;;  %vm78_vm4 = vcmp.lt.s32.totalorder %v58_v12, 2  ;;  %vm79_vm5 = vcmp.lt.s32.totalorder %v58_v12, 3 }
  0x3a   :  { %v64_v32 = vor.u32 %v63_v25, %v62_v15  ;;  %v67_v33 = vor.u32 %v66_v26, %v65_v17  ;;  %v70_v34 = vor.u32 %v69_v27, %v68_v19  ;;  %v263_v22 = vlaneseq  ;;  %v43_v27 = vld [vmem:[%s714_s1] sm:$0x1]  ;;  %s600_s1 = smov [#allocation7]  }
  0x3b   :  { %v73_v35 = vor.u32 %v72_v28, %v71_v21  ;;  %v76_v36 = vor.u32 %v75_v30, %v74_v23  ;;  %vm313_vm12 = vcmp.eq.s32.totalorder %v43_v27, 0  ;;  %vm325_vm15 = vcmp.eq.s32.totalorder %v43_v27, 1  ;;  %s452_s12 = sshll.u32 %s600_s1, 4  ;;  %s453_s12 = int_to_ptr.vmem [resolvable:$true] %s452_s12 }
  0x3c   :  { %v81_v37 = vsel %vm77_vm2, %v61_v24, %v64_v32  ;;  %v82_v38 = vsel %vm80_vm3, %v70_v34, 2102212464  ;;  %v85_v39 = vsel %vm77_vm2, %v64_v32, %v67_v33  ;;  %v89_v40 = vsel %vm77_vm2, %v67_v33, %v70_v34  ;;  %s561_s13 = scalar_lea.vmem %s453_s12, 512  ;;  %p566_p3 = scmp.lt.s32.totalorder %s453_s12, %s453_s12 }
  0x3d   :  { %v83_v41 = vsel %vm79_vm5, %v67_v33, %v82_v38  ;;  %v86_v42 = vsel %vm80_vm3, %v73_v35, 920167782  ;;  %v90_v43 = vsel %vm80_vm3, %v76_v36, 1326507024  ;;  %v264_v24 = vshrl.u32 %v263_v22, 7  ;;  %p562_p2 = scmp.ne.s32.totalorder %s453_s12, %s561_s13  ;;  %p567_p4 = scmp.lt.s32.totalorder %s561_s13, %s561_s13 }
  0x3e   :  { %v87_v44 = vsel %vm79_vm5, %v70_v34, %v86_v42  ;;  %v91_v45 = vsel %vm79_vm5, %v73_v35, %v90_v43  ;;  %v84_v46 = vsel %vm78_vm4, %v81_v37, %v83_v41  ;;  %vm337_vm3 = vcmp.eq.s32.totalorder %v43_v27, 2 }
  0x3f   :  { %v88_v47 = vsel %vm78_vm4, %v85_v39, %v87_v44  ;;  %v92_v48 = vsel %vm78_vm4, %v89_v40, %v91_v45  ;;  %v100_v53 = vmul.u32 %v93_v31, %v84_v46  ;;  %v678_v28 = vsub.s32 0, %v264_v24  ;;  %p568_p5 = por %p567_p4, %p566_p3 }
  0x40   :  { %v661_v49 = vmul.u32.u64.low %v93_v31, %v92_v48  ;;  %v662_v50 = vmul.u32.u64.high %v93_v31, %v92_v48, %v661_v49  ;;  %v664_v51 = vmul.u32.u64.low %v93_v31, %v88_v47  ;;  %v665_v52 = vmul.u32.u64.high %v93_v31, %v88_v47, %v664_v51 }
  0x41   :  { %vm137_vm4 = vweird.f32 %v654_v1  ;;  %vm349_vm5 = vcmp.eq.s32.totalorder %v43_v27, 3  ;;  %v599_v38 = vmov 0.0   ;;  %p569_p6 = pnand %p568_p5, %p562_p2 }
  0x42   :  { %vm102_vm6 = vc.u32 %v662_v50, %v664_v51  ;;  %v103_v54 = vadd.s32 1, %v665_v52  ;;  %v101_v2 = vadd.s32 %v664_v51, %v662_v50  ;;  %v473_v39 = vsel %vm313_vm12, 1.0, %v599_v38 }
  0x43   :  { %v474_v40 = vsel %vm325_vm15, 1.0, %v599_v38  ;;  %v475_v43 = vsel %vm337_vm3, 1.0, %v599_v38  ;;  %v476_v44 = vsel %vm349_vm5, 1.0, %v599_v38  ;;  %vm310_vm12 = vcmask 1046528  }
  0x44   :  { %v104_v55 = vsel %vm102_vm6, %v103_v54, %v665_v52  ;;  %vm298_vm6 = vcmask 1040384   ;;  %v316_v52 = vpack.c.bf16 %v473_v39, %v473_v39  ;;  %v328_v54 = vpack.c.bf16 %v474_v40, %v474_v40 }
  0x45   :  { %v105_v56 = vadd.s32 %v104_v55, %v100_v53  ;;  %v340_v55 = vpack.c.bf16 %v475_v43, %v475_v43 }
  0x47   :  { %v106_v57 = vadd.s32 536870912, %v105_v56 }
  0x49   :  { %v107_v58 = vshrl.u32 %v106_v57, 30 }
  0x4b   :  { %v108_v59 = vshll.u32 %v107_v58, 30  ;;  %v131_v15 = vsub.s32 4, %v107_v58 }
  0x4d   :  { %v109_v60 = vsub.s32 %v105_v56, %v108_v59  ;;  %v132_v18 = vsel %vm47_vm8, %v131_v15, %v107_v58  ;;  %v352_v56 = vpack.c.bf16 %v476_v44, %v476_v44 }
  0x4e   :  { %v134_v21 = vsel %vm46_vm9, 0, %v132_v18 }
  0x4f   :  { %v111_v61 = vsub.s32 0, %v109_v60  ;;  %v138_v23 = vadd.s32 3, %v134_v21  ;;  %v242_v26 = vand.u32 3, %v134_v21 }
  0x51   :  { %v466_v62 = vmin.u32 %v111_v61, %v109_v60  ;;  %v139_v25 = vand.u32 3, %v138_v23  ;;  %vm247_vm11 = vcmp.eq.s32.totalorder %v242_v26, 2  ;;  %vm244_vm14 = vcmp.eq.s32.totalorder %v242_v26, 0 }
  0x52   :  { %vm243_vm2 = vcmp.lt.s32.totalorder %v242_v26, 2  ;;  %v512_v26 = vld [vmem:[#allocation5 + $0x8] sm:$0xff]  }
  0x53   :  { %v113_v63 = vclz %v466_v62  ;;  %vm144_vm10 = vcmp.eq.s32.totalorder %v139_v25, 2  ;;  %vm141_vm13 = vcmp.eq.s32.totalorder %v139_v25, 0  ;;  %vm140_vm1 = vcmp.lt.s32.totalorder %v139_v25, 2 }
  0x55   :  { %v467_v0 = vadd.s32 4294967294, %v113_v63 }
  0x57   :  { %vm468_vm7 = vcmp.lt.s32.totalorder %v467_v0, 0 }
  0x58   :  { %v116_v3 = vsel %vm468_vm7, 0, %v467_v0  ;;  %vm300_vm7 = vcmask 1041408  }
  0x59   :  { %v117_v4 = vsub.s32 32, %v116_v3  ;;  %v118_v6 = vshll.u32 %v109_v60, %v116_v3  ;;  %v121_v7 = vsub.s32 4294967266, %v116_v3 }
  0x5b   :  { %v119_v8 = vshrl.u32 %v101_v2, %v117_v4  ;;  %v122_v9 = vadd.s32 127, %v121_v7  ;;  %v318_v2 = vpack.i.b16 %v316_v52, %v316_v52  ;;  %v330_v4 = vpack.i.b16 %v328_v54, %v328_v54 }
  0x5c   :  { %v354_v7 = vpack.i.b16 %v352_v56, %v352_v56 }
  0x5d   :  { %v120_v10 = vor.u32 %v119_v8, %v118_v6  ;;  %v123_v11 = vshll.u32 %v122_v9, 23  ;;  %v342_v6 = vpack.i.b16 %v340_v55, %v340_v55 }
  0x5e   :  { %v359_v15 = vrot.slane %v354_v7, %v678_v28 }
  0x5f   :  { %v124_v12 = vor.u32 4788187, %v123_v11  ;;  %v127_v13 = vcvt.s32.f32 %v120_v10  ;;  %v323_v11 = vrot.slane %v318_v2, %v678_v28 }
  0x61   :  { %v125_v14 = vand.u32 2147483647, %v124_v12 }
  0x63   :  { %v128_v16 = vmul.f32 %v127_v13, %v125_v14  ;;  %v335_v13 = vrot.slane %v330_v4, %v678_v28  ;;  %v347_v14 = vrot.slane %v342_v6, %v678_v28 }
  0x65   :  { %v129_v17 = vxor.u32 2147483648, %v128_v16 }
  0x67   :  { %v130_v19 = vsel %vm47_vm8, %v129_v17, %v128_v16  ;;  %vm302_vm8 = vcmask 1042432  }
  0x68   :  { %v133_v20 = vsel %vm46_vm9, %v654_v1, %v130_v19  ;;  %vm304_vm9 = vcmask 1043456  }
  0x69   :  { %513 = vcosq.f32 %v133_v20 }
  0x6a   :  { %515 = vsinq.f32 %v133_v20 }
  0x73   :  { %v514_v5 = vpop.eup %513 }
  0x74   :  { %v516_v29 = vpop.eup %515  ;;  %v145_v30 = vxor.u32 2147483648, %v514_v5 }
  0x75   :  { %v142_v31 = vxor.u32 2147483648, %v516_v29 }
  0x76   :  { %v146_v32 = vsel %vm144_vm10, %v145_v30, %v516_v29  ;;  %v249_v33 = vsel %vm247_vm11, %v145_v30, %v516_v29  ;;  %vm306_vm10 = vcmask 1044480   ;;  %vm308_vm11 = vcmask 1045504  }
  0x77   :  { %v143_v34 = vsel %vm141_vm13, %v514_v5, %v142_v31  ;;  %v246_v35 = vsel %vm244_vm14, %v514_v5, %v142_v31 }
  0x78   :  { %v147_v36 = vsel %vm140_vm1, %v143_v34, %v146_v32  ;;  %v250_v37 = vsel %vm243_vm2, %v246_v35, %v249_v33 }
  0x79   :  { %v148_v41 = vsel %vm137_vm4, nan, %v147_v36  ;;  %v251_v42 = vsel %vm137_vm4, nan, %v250_v37 }
  0x7a   :  { %v252_v1 = vmul.f32 2.0, %v148_v41  ;;  %v254_v45 = vmul.f32 %v251_v42, %v251_v42  ;;  %v255_v46 = vmul.f32 %v148_v41, %v148_v41  ;;  %v266_v47 = vrot.slane %v148_v41, %v678_v28 }
  0x7b   :  { %v272_v48 = vrot.slane %v251_v42, %v678_v28 }
  0x7c   :  { %v253_v49 = vmul.f32 %v252_v1, %v251_v42  ;;  %v256_v50 = vsub.f32 %v254_v45, %v255_v46  ;;  %v299_v51 = vsel %vm298_vm6, 1.0, %v266_v47 }
  0x7d   :  { %v301_v53 = vsel %vm300_vm7, %v299_v51, %v272_v48 }
  0x7e   :  { %v257_v57 = vmul.f32 2.0, %v253_v49  ;;  %v259_v58 = vmul.f32 %v256_v50, %v256_v50  ;;  %v260_v59 = vmul.f32 %v253_v49, %v253_v49  ;;  %v278_v60 = vrot.slane %v253_v49, %v678_v28 }
  0x7f   :  { %v284_v61 = vrot.slane %v256_v50, %v678_v28 }
  0x80   :  { %v258_v62 = vmul.f32 %v257_v57, %v256_v50  ;;  %v261_v63 = vsub.f32 %v259_v58, %v260_v59  ;;  %v303_v0 = vsel %vm302_vm8, %v301_v53, %v278_v60 }
  0x81   :  { %v305_v3 = vsel %vm304_vm9, %v303_v0, %v284_v61 }
  0x82   :  { %v290_v8 = vrot.slane %v258_v62, %v678_v28  ;;  %v296_v9 = vrot.slane %v261_v63, %v678_v28 }
  0x84   :  { %v307_v10 = vsel %vm306_vm10, %v305_v3, %v290_v8 }
  0x85   :  { %v309_v12 = vsel %vm308_vm11, %v307_v10, %v296_v9 }
  0x86   :  { %v311_v16 = vsel %vm310_vm12, %v309_v12, 0.0 }
  0x87   :  { %v312_v17 = vpack.c.bf16 %v311_v16, %v311_v16 }
  0x89   :  { %v324_v18 = vmul.bf16 %v323_v11, %v312_v17  ;;  %v336_v19 = vmul.bf16 %v335_v13, %v312_v17  ;;  %v348_v20 = vmul.bf16 %v347_v14, %v312_v17  ;;  %v360_v21 = vmul.bf16 %v359_v15, %v312_v17 }
  0x8b   :  { %v362_v22 = vrot.slane %v336_v19, 4  ;;  %v364_v23 = vrot.slane %v360_v21, 4 }
  0x8d   :  { %v367_v24 = vsel %vm304_vm9, %v324_v18, %v362_v22  ;;  %v371_v25 = vsel %vm304_vm9, %v348_v20, %v364_v23 }
  0x8e   :  { %485 = vmatprep.subr.bf16.mxu0 %v367_v24 }
  0x8f   :  { %486 = vmatpush3.bf16.msra.mxu0 %v367_v24 }
  0x90   :  { %487 = vmatprep.subr.bf16.mxu0 %v371_v25 }
  0x93   :  { %488 = vmatpush3.bf16.msra.mxu0 %v371_v25 }
  0x96   :  { %490 = vmatmul.mubr.msk.bf16.vlgmr.msra.gmra.mrb[0].mxu0 %vm387_vm0, %v512_v26 }
 0x169   :  { %v491_v27 = vpop.f32.mrb[0].mxu0 }
 0x16a   :  { %445 = vst [vmem:[#allocation7 + $0x10] sm:$0xff] %v491_v27  ;;  %v428_v28 = vpop.f32.mrb[1].mxu0 }
 0x16b   :  { %443 = vst [vmem:[#allocation7] sm:$0xff] %v428_v28  ;;  %v492_v5 = vpop.f32.mrb[2].mxu0 }
 0x16c   :  { %446 = vst [vmem:[#allocation7 + $0x18] sm:$0xff] %v492_v5  ;;  %v431_v29 = vpop.f32.mrb[3].mxu0 }
 0x16d   :  { %444 = vst [vmem:[#allocation7 + $0x8] sm:$0xff] %v431_v29 }
 0x16e   :  { %572 = shalt.err (!%p569_p6)
}
 0x16f   :  { %s573_s16 = scalar_lea.hbm %s716_s3, 512 }
 0x170   :  { %p574_p7 = scmp.ne.s32.totalorder %s716_s3, %s573_s16  ;;  %p577_p8 = scmp.lt.u32.totalorder %s573_s16, %s716_s3 }
 0x172   :  { %p579_p9 = pnand %p577_p8, %p574_p7 }
 0x174   :  { %582 = shalt.err (!%p579_p9)
}
 0x175   :  { %s601_s21 = smov 128   ;;  %s602_s22 = smov 8  }
 0x176   :  { %458 = dma.vmem_to_hbm [thread:$0]  %s453_s12, 512, %s716_s3, [#allocation4], %s601_s21, %s601_s21, %s602_s22  }
 0x177   :  { %587 = dma.done.wait [#allocation4], 512  }
 0x178   :  { %588 = vsyncadd [#allocation4], 4294966784 }
 0x179   :  { %462 = vsyncpa [#allocation3], 1 }
 0x17a   :  { %463 = vsyncpa [#allocation6], 1 }
 0x17b   :  { %464 = vsyncpa [#allocation4], 1 }

</bundles_post_ra>
